<compile_context>
chip_gen: v6e
topology: v6e:2x2x1
jax: 0.10.0
libtpu: 0.0.40
codegen_flags: <defaults>
</compile_context>

<pallas_src>
import jax
import jax.numpy as jnp
import numpy as np
from jax import lax
from jax.experimental import pallas as pl
from jax.experimental.pallas import tpu as pltpu

K = 5            # conv kernel size
PAD = K // 2     # same padding


def _vmem_capacity_bytes():
    """Physical VMEM capacity of the local TPU (fallback: v7x-sized 64 MiB)."""
    try:
        cap = int(pltpu.get_tpu_info().vmem_capacity_bytes)
        if cap > 0:
            return cap
    except Exception:
        pass
    return 64 << 20


def _pick_channel_tile(C, HW, itemsize, budget_bytes):
    """Channel tile: whole C if it fits the input-block budget, otherwise the
    largest multiple of 8 under budget that divides C; if no reasonably large
    divisor exists, a non-dividing multiple of 8 (the kernel masks the tail)."""
    max_tc = max(1, budget_bytes // (2 * HW * itemsize))   # 2x: double buffering
    if C <= max_tc:
        return C
    tc = max(8, (min(C, max_tc) // 8) * 8)
    t = tc
    while t >= 8:
        if C % t == 0 and t >= max(8, tc // 4):
            return t
        t -= 8
    return tc        # non-dividing tile; wrapper uses cdiv grid + masked tail


def _make_kernel(C, TC, H, W):
    HW = H * W
    HWK = HW + K - 1                    # stack width (room for the kw shifts)
    OFF = PAD * W + PAD                 # interior offset in the padded flat map
    L = HW + (K - 1) * W + 2 * PAD      # padded flat map length
    TAIL = L - OFF - HW
    inv_c = 1.0 / C
    mask_tail = (C % TC) != 0           # last channel tile is partial
    full = TC // 8                      # number of full 8-row strips
    rem = TC % 8

    def kernel(w_ref, mask_ref, x_ref, o_ref, max_ref, sum_ref, fpad_ref):
        # w_ref:    VMEM (K, 2K) f32: [:, :K] = max-map kernel, [:, K:] = mean-map kernel
        # mask_ref: VMEM (K, HW) f32 column-validity masks (one per kw tap)
        # x_ref:    VMEM (TC, HW) channel tile of one batch element (lane-dense)
        # o_ref:    VMEM (1, HW) output row for this batch element
        # max_ref/sum_ref: VMEM (1, HW) f32 running channel max / sum
        # fpad_ref: VMEM (2, L) f32 zero-padded, row-flattened feature maps
        ci = pl.program_id(1)

        @pl.when(ci == 0)
        def _init():
            max_ref[...] = jnp.full_like(max_ref, -jnp.inf)
            sum_ref[...] = jnp.zeros_like(sum_ref)

        base = ci * TC   # global channel index of this tile's first row

        def masked(blk, row0, nrows):
            # Only traced when C % TC != 0: invalid tail rows -> (-inf, 0).
            if not mask_tail:
                return blk, blk
            ids = lax.broadcasted_iota(jnp.int32, (nrows, 1), 0) + (base + row0)
            valid = ids < C
            return jnp.where(valid, blk, -jnp.inf), jnp.where(valid, blk, 0.0)

        # ---- fused channel max + sum via 8-row (sublane-aligned) strips ----
        m = None
        s = None
        if full > 0:
            blk0 = x_ref[0:8, :].astype(jnp.float32)
            m8, s8 = masked(blk0, 0, 8)
            if full <= 32:
                for g in range(1, full):
                    blk = x_ref[g * 8:(g + 1) * 8, :].astype(jnp.float32)
                    bm, bs = masked(blk, g * 8, 8)
                    m8 = jnp.maximum(m8, bm)
                    s8 = s8 + bs
            else:
                def body(g, carry):
                    mm, ss = carry
                    off = pl.multiple_of(g * 8, 8)
                    blk = x_ref[pl.ds(off, 8), :].astype(jnp.float32)
                    bm, bs = masked(blk, g * 8, 8)
                    return jnp.maximum(mm, bm), ss + bs
                m8, s8 = lax.fori_loop(1, full, body, (m8, s8), unroll=8)
            m = jnp.max(m8, axis=0, keepdims=True)      # cross-sublane (XLU)
            s = jnp.sum(s8, axis=0, keepdims=True)
        if rem > 0:
            tail = x_ref[full * 8:full * 8 + rem, :].astype(jnp.float32)
            tm, ts = masked(tail, full * 8, rem)
            tmax = jnp.max(tm, axis=0, keepdims=True)
            tsum = jnp.sum(ts, axis=0, keepdims=True)
            m = tmax if m is None else jnp.maximum(m, tmax)
            s = tsum if s is None else s + tsum

        max_ref[...] = jnp.maximum(max_ref[...], m)
        sum_ref[...] = sum_ref[...] + s

        @pl.when(ci == pl.num_programs(1) - 1)
        def _finalize():
            # Zero only the halo (interior gets overwritten below).
            fpad_ref[:, 0:OFF] = jnp.zeros((2, OFF), jnp.float32)
            fpad_ref[:, OFF + HW:L] = jnp.zeros((2, TAIL), jnp.float32)
            fpad_ref[0:1, OFF:OFF + HW] = max_ref[...]
            fpad_ref[1:2, OFF:OFF + HW] = sum_ref[...] * inv_c

            pmax = fpad_ref[0:1, :]      # (1, L)
            pmean = fpad_ref[1:2, :]     # (1, L)

            # kh packed into sublanes: one shifted (K, HW+K-1) stack per map.
            smax = jnp.concatenate(
                [pmax[:, kh * W: kh * W + HWK] for kh in range(K)], axis=0)
            smean = jnp.concatenate(
                [pmean[:, kh * W: kh * W + HWK] for kh in range(K)], axis=0)

            # Per-kw: full-vreg FMAs on (K, HW) with (K,1) weight columns,
            # horizontal-wrap cancelled by the precomputed column masks.
            acc_k = jnp.zeros((K, HW), jnp.float32)
            for kw in range(K):
                tap = (w_ref[:, kw:kw + 1] * smax[:, kw:kw + HW]
                       + w_ref[:, K + kw:K + kw + 1] * smean[:, kw:kw + HW])
                acc_k = acc_k + mask_ref[kw:kw + 1, :] * tap
            y = jnp.sum(acc_k, axis=0, keepdims=True)   # reduce over kh
            y = jnp.maximum(y, 0.0)                     # ReLU
            o_ref[...] = (jax.nn.sigmoid(y) * y).astype(o_ref.dtype)

    return kernel


def attention_gate(x, weight, channel_tile=None):
    """x: (B, C, H, W), weight: (1, 2, K, K) -> (B, 1, H, W)."""
    B, C, H, W = x.shape
    HW = H * W
    HWK = HW + K - 1
    L = HW + (K - 1) * W + 2 * PAD
    itemsize = jnp.dtype(x.dtype).itemsize

    cap = _vmem_capacity_bytes()              # 64 MiB on v7x, 128 MiB on v5e/v6e
    if channel_tile is None:
        TC = _pick_channel_tile(C, HW, itemsize, budget_bytes=cap // 4)
    else:
        TC = channel_tile
    TC = int(min(TC, C))
    nc = pl.cdiv(C, TC)

    x_flat = x.reshape(B, C, HW)                          # free: contiguous view
    # Weight columns: w_cols[kh, kw] = W_max[kh, kw], w_cols[kh, K+kw] = W_mean[kh, kw]
    w_cols = jnp.concatenate([weight[0, 0], weight[0, 1]], axis=1).astype(jnp.float32)

    # Column-validity masks for the K horizontal taps (numpy constants; avoid
    # per-call device compute and in-kernel integer mod).
    cols = np.arange(HW, dtype=np.int64) % W
    col_mask = jnp.asarray(np.stack(
        [((cols + (kw - PAD) >= 0) & (cols + (kw - PAD) < W)).astype(np.float32)
         for kw in range(K)], axis=0))                    # (K, HW)

    # Explicit VMEM accounting: blocks (double-buffered), scratch, temporaries.
    needed = (2 * TC * HW * itemsize          # x block (double buffered)
              + 2 * HW * itemsize             # output block
              + 2 * K * HW * 4                # column-mask block
              + 2 * K * 2 * K * 4             # weight block
              + (2 * HW + 2 * L) * 4          # scratch: accumulators + padded maps
              + 3 * 8 * HW * 4                # strip-reduction temporaries
              + (2 * K * HWK + K * HW) * 4)   # conv stacks + kh accumulator
    usable = cap - cap // 8                   # ~12.5% headroom for Mosaic scratch
    vmem_limit = int(min(usable, max(needed + (4 << 20), 32 << 20)))

    out_flat = pl.pallas_call(
        _make_kernel(C, TC, H, W),
        out_shape=jax.ShapeDtypeStruct((B, 1, HW), x.dtype),
        grid=(B, nc),
        in_specs=[
            # tiny weight-column table, resident in VMEM
            pl.BlockSpec((K, 2 * K), lambda b, c: (0, 0)),
            # column masks: constant block, resident in VMEM
            pl.BlockSpec((K, HW), lambda b, c: (0, 0)),
            # lane-dense channel tile of one batch element
            pl.BlockSpec((pl.Squeezed(), TC, HW), lambda b, c: (b, c, 0)),
        ],
        out_specs=pl.BlockSpec((pl.Squeezed(), 1, HW), lambda b, c: (b, 0, 0)),
        scratch_shapes=[
            pltpu.VMEM((1, HW), jnp.float32),    # running channel max
            pltpu.VMEM((1, HW), jnp.float32),    # running channel sum
            pltpu.VMEM((2, L), jnp.float32),     # zero-padded flat feature maps
        ],
        compiler_params=pltpu.CompilerParams(
            dimension_semantics=("parallel", "arbitrary"),
            vmem_limit_bytes=vmem_limit),
    )(w_cols, col_mask, x_flat)

    return out_flat.reshape(B, 1, H, W)


def ref_attention_gate(x, weight):
    """Pure-JAX reference mirroring the PyTorch module."""
    mx = jnp.max(x, axis=1, keepdims=True)
    mn = jnp.mean(x, axis=1, keepdims=True)
    feat = jnp.concatenate([mx, mn], axis=1)             # (B, 2, H, W)
    y = lax.conv_general_dilated(
        feat, weight, window_strides=(1, 1),
        padding=((PAD, PAD), (PAD, PAD)),
        dimension_numbers=("NCHW", "OIHW", "NCHW"))
    y = jnp.maximum(y, 0.0)
    return jax.nn.sigmoid(y) * y


if __name__ == "__main__":
    key = jax.random.PRNGKey(0)
    kx1, kw1, kx2, kw2, kx3, kw3 = jax.random.split(key, 6)
    fan_in = 2 * K * K
    scale = (1.0 / fan_in) ** 0.5

    # Case 1: small shape implied by the module (C < 8 -> remainder-strip path).
    B, C, H, W = 2, 4, 16, 16
    x = jax.random.normal(kx1, (B, C, H, W), dtype=jnp.float32)
    w = jax.random.normal(kw1, (1, 2, K, K), dtype=jnp.float32) * scale
    out = jax.block_until_ready(attention_gate(x, w))
    ref = ref_attention_gate(x, w)
    assert out.shape == (B, 1, H, W)
    assert jnp.allclose(out, ref, atol=1e-5, rtol=1e-5), float(jnp.max(jnp.abs(out - ref)))

    # Case 2: multi-step channel-reduction grid axis (nc > 1, one strip per step).
    B2, C2, H2, W2 = 2, 16, 16, 16
    x2 = jax.random.normal(kx2, (B2, C2, H2, W2), dtype=jnp.float32)
    w2 = jax.random.normal(kw2, (1, 2, K, K), dtype=jnp.float32) * scale
    out2 = jax.block_until_ready(attention_gate(x2, w2, channel_tile=8))
    ref2 = ref_attention_gate(x2, w2)
    assert jnp.allclose(out2, ref2, atol=1e-5, rtol=1e-5), float(jnp.max(jnp.abs(out2 - ref2)))

    # Case 3: multi-strip reduction inside a single channel tile (TC = 32).
    B3, C3, H3, W3 = 1, 32, 16, 16
    x3 = jax.random.normal(kx3, (B3, C3, H3, W3), dtype=jnp.float32)
    w3 = jax.random.normal(kw3, (1, 2, K, K), dtype=jnp.float32) * scale
    out3 = jax.block_until_ready(attention_gate(x3, w3))
    ref3 = ref_attention_gate(x3, w3)
    assert jnp.allclose(out3, ref3, atol=1e-5, rtol=1e-5), float(jnp.max(jnp.abs(out3 - ref3)))

    print("KERNEL_OK")
</pallas_src>

<mosaic_0001>
module attributes {stable_mosaic.version = 11 : i64} {
  func.func @kernel(%arg0: i32, %arg1: i32, %arg2: memref<5x10xf32, #tpu.memory_space<vmem>>, %arg3: memref<5x256xf32, #tpu.memory_space<vmem>>, %arg4: memref<1x4x256xf32, #tpu.memory_space<vmem>>, %arg5: memref<1x1x256xf32, #tpu.memory_space<vmem>>, %arg6: memref<1x256xf32, #tpu.memory_space<vmem>>, %arg7: memref<1x256xf32, #tpu.memory_space<vmem>>, %arg8: memref<2x324xf32, #tpu.memory_space<vmem>>) attributes {dimension_semantics = [#tpu.dimension_semantics<parallel>, #tpu.dimension_semantics<arbitrary>], iteration_bounds = array<i64: 2, 1>, scalar_prefetch = 0 : i64, scratch_operands = 3 : i64, tpu.core_type = #tpu.core_type<tc>, window_params = [{pipeline_mode = #tpu.pipeline_mode<synchronous>, transform_indices = @transform_0, window_bounds = array<i64: 5, 10>}, {pipeline_mode = #tpu.pipeline_mode<synchronous>, transform_indices = @transform_1, window_bounds = array<i64: 5, 256>}, {transform_indices = @transform_2, window_bounds = array<i64: 1, 4, 256>}, {transform_indices = @transform_3, window_bounds = array<i64: 1, 1, 256>}]} {
    %c0_i32 = arith.constant 0 : i32
    %0 = arith.cmpi eq, %arg1, %c0_i32 : i32
    %1 = arith.extui %0 : i1 to i32
    %c0_i32_0 = arith.constant 0 : i32
    %2 = arith.cmpi ne, %1, %c0_i32_0 : i32
    scf.if %2 {
      %cst_14 = arith.constant 0xFF800000 : f32
      %18 = vector.broadcast %cst_14 : f32 to vector<1x256xf32>
      %c0_15 = arith.constant 0 : index
      %c0_16 = arith.constant 0 : index
      %19 = vector.load %arg6[%c0_15, %c0_16] : memref<1x256xf32, #tpu.memory_space<vmem>>, vector<1x256xf32>
      tpu.vector_store %arg6[%c0_15, %c0_16], %18 {strides = array<i32>} : memref<1x256xf32, #tpu.memory_space<vmem>>, vector<1x256xf32>,
      %cst_17 = arith.constant 0.000000e+00 : f32
      %20 = vector.broadcast %cst_17 : f32 to vector<1x256xf32>
      %c0_18 = arith.constant 0 : index
      %c0_19 = arith.constant 0 : index
      %21 = vector.load %arg7[%c0_18, %c0_19] : memref<1x256xf32, #tpu.memory_space<vmem>>, vector<1x256xf32>
      tpu.vector_store %arg7[%c0_18, %c0_19], %20 {strides = array<i32>} : memref<1x256xf32, #tpu.memory_space<vmem>>, vector<1x256xf32>,
    } else {
    }
    %c0 = arith.constant 0 : index
    %c0_1 = arith.constant 0 : index
    %c0_2 = arith.constant 0 : index
    %3 = vector.load %arg4[%c0, %c0_1, %c0_2] : memref<1x4x256xf32, #tpu.memory_space<vmem>>, vector<1x4x256xf32>
    %4 = vector.shape_cast %3 : vector<1x4x256xf32> to vector<4x256xf32>
    %cst = arith.constant dense<0xFF800000> : vector<256xf32>
    %5 = vector.multi_reduction <maximumf>, %4, %cst [0] : vector<4x256xf32> to vector<256xf32>
    %6 = vector.shape_cast %5 : vector<256xf32> to vector<1x256xf32>
    %cst_3 = arith.constant dense<0.000000e+00> : vector<256xf32>
    %7 = vector.multi_reduction <add>, %4, %cst_3 [0] : vector<4x256xf32> to vector<256xf32>
    %8 = vector.shape_cast %7 : vector<256xf32> to vector<1x256xf32>
    %c0_4 = arith.constant 0 : index
    %c0_5 = arith.constant 0 : index
    %9 = vector.load %arg6[%c0_4, %c0_5] : memref<1x256xf32, #tpu.memory_space<vmem>>, vector<1x256xf32>
    %10 = arith.maximumf %9, %6 : vector<1x256xf32>
    %c0_6 = arith.constant 0 : index
    %c0_7 = arith.constant 0 : index
    %11 = vector.load %arg6[%c0_6, %c0_7] : memref<1x256xf32, #tpu.memory_space<vmem>>, vector<1x256xf32>
    tpu.vector_store %arg6[%c0_6, %c0_7], %10 {strides = array<i32>} : memref<1x256xf32, #tpu.memory_space<vmem>>, vector<1x256xf32>,
    %c0_8 = arith.constant 0 : index
    %c0_9 = arith.constant 0 : index
    %12 = vector.load %arg7[%c0_8, %c0_9] : memref<1x256xf32, #tpu.memory_space<vmem>>, vector<1x256xf32>
    %13 = arith.addf %12, %8 : vector<1x256xf32>
    %c0_10 = arith.constant 0 : index
    %c0_11 = arith.constant 0 : index
    %14 = vector.load %arg7[%c0_10, %c0_11] : memref<1x256xf32, #tpu.memory_space<vmem>>, vector<1x256xf32>
    tpu.vector_store %arg7[%c0_10, %c0_11], %13 {strides = array<i32>} : memref<1x256xf32, #tpu.memory_space<vmem>>, vector<1x256xf32>,
    %c0_i32_12 = arith.constant 0 : i32
    %15 = arith.cmpi eq, %arg1, %c0_i32_12 : i32
    %16 = arith.extui %15 : i1 to i32
    %c0_i32_13 = arith.constant 0 : i32
    %17 = arith.cmpi ne, %16, %c0_i32_13 : i32
    scf.if %17 {
      %cst_14 = arith.constant 0.000000e+00 : f32
      %18 = vector.broadcast %cst_14 : f32 to vector<2x34xf32>
      %c0_15 = arith.constant 0 : index
      %c0_16 = arith.constant 0 : index
      %19 = vector.load %arg8[%c0_15, %c0_16] : memref<2x324xf32, #tpu.memory_space<vmem>>, vector<2x34xf32>
      tpu.vector_store %arg8[%c0_15, %c0_16], %18 {strides = array<i32>} : memref<2x324xf32, #tpu.memory_space<vmem>>, vector<2x34xf32>,
      %cst_17 = arith.constant 0.000000e+00 : f32
      %20 = vector.broadcast %cst_17 : f32 to vector<2x34xf32>
      %c0_18 = arith.constant 0 : index
      %c290 = arith.constant 290 : index
      %21 = vector.load %arg8[%c0_18, %c290] : memref<2x324xf32, #tpu.memory_space<vmem>>, vector<2x34xf32>
      tpu.vector_store %arg8[%c0_18, %c290], %20 {strides = array<i32>} : memref<2x324xf32, #tpu.memory_space<vmem>>, vector<2x34xf32>,
      %c0_19 = arith.constant 0 : index
      %c0_20 = arith.constant 0 : index
      %22 = vector.load %arg6[%c0_19, %c0_20] : memref<1x256xf32, #tpu.memory_space<vmem>>, vector<1x256xf32>
      %c0_21 = arith.constant 0 : index
      %c34 = arith.constant 34 : index
      %23 = vector.load %arg8[%c0_21, %c34] : memref<2x324xf32, #tpu.memory_space<vmem>>, vector<1x256xf32>
      tpu.vector_store %arg8[%c0_21, %c34], %22 {strides = array<i32>} : memref<2x324xf32, #tpu.memory_space<vmem>>, vector<1x256xf32>,
      %c0_22 = arith.constant 0 : index
      %c0_23 = arith.constant 0 : index
      %24 = vector.load %arg7[%c0_22, %c0_23] : memref<1x256xf32, #tpu.memory_space<vmem>>, vector<1x256xf32>
      %cst_24 = arith.constant 2.500000e-01 : f32
      %25 = vector.broadcast %cst_24 : f32 to vector<1x256xf32>
      %26 = arith.mulf %24, %25 : vector<1x256xf32>
      %c1 = arith.constant 1 : index
      %c34_25 = arith.constant 34 : index
      %27 = vector.load %arg8[%c1, %c34_25] : memref<2x324xf32, #tpu.memory_space<vmem>>, vector<1x256xf32>
      tpu.vector_store %arg8[%c1, %c34_25], %26 {strides = array<i32>} : memref<2x324xf32, #tpu.memory_space<vmem>>, vector<1x256xf32>,
      %c0_26 = arith.constant 0 : index
      %c0_27 = arith.constant 0 : index
      %28 = vector.load %arg8[%c0_26, %c0_27] : memref<2x324xf32, #tpu.memory_space<vmem>>, vector<1x324xf32>
      %c1_28 = arith.constant 1 : index
      %c0_29 = arith.constant 0 : index
      %29 = vector.load %arg8[%c1_28, %c0_29] : memref<2x324xf32, #tpu.memory_space<vmem>>, vector<1x324xf32>
      %30 = vector.extract_strided_slice %28 {offsets = [0, 0], sizes = [1, 260], strides = [1, 1]} : vector<1x324xf32> to vector<1x260xf32>
      %31 = vector.extract_strided_slice %28 {offsets = [0, 16], sizes = [1, 260], strides = [1, 1]} : vector<1x324xf32> to vector<1x260xf32>
      %32 = vector.extract_strided_slice %28 {offsets = [0, 32], sizes = [1, 260], strides = [1, 1]} : vector<1x324xf32> to vector<1x260xf32>
      %33 = vector.extract_strided_slice %28 {offsets = [0, 48], sizes = [1, 260], strides = [1, 1]} : vector<1x324xf32> to vector<1x260xf32>
      %34 = vector.extract_strided_slice %28 {offsets = [0, 64], sizes = [1, 260], strides = [1, 1]} : vector<1x324xf32> to vector<1x260xf32>
      %35 = tpu.concatenate %30, %31, %32, %33, %34 in 0 : vector<1x260xf32>, vector<1x260xf32>, vector<1x260xf32>, vector<1x260xf32>, vector<1x260xf32> -> vector<5x260xf32>
      %36 = vector.extract_strided_slice %29 {offsets = [0, 0], sizes = [1, 260], strides = [1, 1]} : vector<1x324xf32> to vector<1x260xf32>
      %37 = vector.extract_strided_slice %29 {offsets = [0, 16], sizes = [1, 260], strides = [1, 1]} : vector<1x324xf32> to vector<1x260xf32>
      %38 = vector.extract_strided_slice %29 {offsets = [0, 32], sizes = [1, 260], strides = [1, 1]} : vector<1x324xf32> to vector<1x260xf32>
      %39 = vector.extract_strided_slice %29 {offsets = [0, 48], sizes = [1, 260], strides = [1, 1]} : vector<1x324xf32> to vector<1x260xf32>
      %40 = vector.extract_strided_slice %29 {offsets = [0, 64], sizes = [1, 260], strides = [1, 1]} : vector<1x324xf32> to vector<1x260xf32>
      %41 = tpu.concatenate %36, %37, %38, %39, %40 in 0 : vector<1x260xf32>, vector<1x260xf32>, vector<1x260xf32>, vector<1x260xf32>, vector<1x260xf32> -> vector<5x260xf32>
      %cst_30 = arith.constant 0.000000e+00 : f32
      %42 = vector.broadcast %cst_30 : f32 to vector<5x256xf32>
      %c0_31 = arith.constant 0 : index
      %c0_32 = arith.constant 0 : index
      %43 = vector.load %arg2[%c0_31, %c0_32] : memref<5x10xf32, #tpu.memory_space<vmem>>, vector<5x1xf32>
      %44 = vector.extract_strided_slice %35 {offsets = [0, 0], sizes = [5, 256], strides = [1, 1]} : vector<5x260xf32> to vector<5x256xf32>
      %45 = vector.broadcast %43 : vector<5x1xf32> to vector<5x256xf32>
      %46 = arith.mulf %45, %44 : vector<5x256xf32>
      %c0_33 = arith.constant 0 : index
      %c5 = arith.constant 5 : index
      %47 = vector.load %arg2[%c0_33, %c5] : memref<5x10xf32, #tpu.memory_space<vmem>>, vector<5x1xf32>
      %48 = vector.extract_strided_slice %41 {offsets = [0, 0], sizes = [5, 256], strides = [1, 1]} : vector<5x260xf32> to vector<5x256xf32>
      %49 = vector.broadcast %47 : vector<5x1xf32> to vector<5x256xf32>
      %50 = arith.mulf %49, %48 : vector<5x256xf32>
      %51 = arith.addf %46, %50 : vector<5x256xf32>
      %c0_34 = arith.constant 0 : index
      %c0_35 = arith.constant 0 : index
      %52 = vector.load %arg3[%c0_34, %c0_35] : memref<5x256xf32, #tpu.memory_space<vmem>>, vector<1x256xf32>
      %53 = vector.broadcast %52 : vector<1x256xf32> to vector<5x256xf32>
      %54 = arith.mulf %53, %51 : vector<5x256xf32>
      %55 = arith.addf %42, %54 : vector<5x256xf32>
      %c0_36 = arith.constant 0 : index
      %c1_37 = arith.constant 1 : index
      %56 = vector.load %arg2[%c0_36, %c1_37] : memref<5x10xf32, #tpu.memory_space<vmem>>, vector<5x1xf32>
      %57 = vector.extract_strided_slice %35 {offsets = [0, 1], sizes = [5, 256], strides = [1, 1]} : vector<5x260xf32> to vector<5x256xf32>
      %58 = vector.broadcast %56 : vector<5x1xf32> to vector<5x256xf32>
      %59 = arith.mulf %58, %57 : vector<5x256xf32>
      %c0_38 = arith.constant 0 : index
      %c6 = arith.constant 6 : index
      %60 = vector.load %arg2[%c0_38, %c6] : memref<5x10xf32, #tpu.memory_space<vmem>>, vector<5x1xf32>
      %61 = vector.extract_strided_slice %41 {offsets = [0, 1], sizes = [5, 256], strides = [1, 1]} : vector<5x260xf32> to vector<5x256xf32>
      %62 = vector.broadcast %60 : vector<5x1xf32> to vector<5x256xf32>
      %63 = arith.mulf %62, %61 : vector<5x256xf32>
      %64 = arith.addf %59, %63 : vector<5x256xf32>
      %c1_39 = arith.constant 1 : index
      %c0_40 = arith.constant 0 : index
      %65 = vector.load %arg3[%c1_39, %c0_40] : memref<5x256xf32, #tpu.memory_space<vmem>>, vector<1x256xf32>
      %66 = vector.broadcast %65 : vector<1x256xf32> to vector<5x256xf32>
      %67 = arith.mulf %66, %64 : vector<5x256xf32>
      %68 = arith.addf %55, %67 : vector<5x256xf32>
      %c0_41 = arith.constant 0 : index
      %c2 = arith.constant 2 : index
      %69 = vector.load %arg2[%c0_41, %c2] : memref<5x10xf32, #tpu.memory_space<vmem>>, vector<5x1xf32>
      %70 = vector.extract_strided_slice %35 {offsets = [0, 2], sizes = [5, 256], strides = [1, 1]} : vector<5x260xf32> to vector<5x256xf32>
      %71 = vector.broadcast %69 : vector<5x1xf32> to vector<5x256xf32>
      %72 = arith.mulf %71, %70 : vector<5x256xf32>
      %c0_42 = arith.constant 0 : index
      %c7 = arith.constant 7 : index
      %73 = vector.load %arg2[%c0_42, %c7] : memref<5x10xf32, #tpu.memory_space<vmem>>, vector<5x1xf32>
      %74 = vector.extract_strided_slice %41 {offsets = [0, 2], sizes = [5, 256], strides = [1, 1]} : vector<5x260xf32> to vector<5x256xf32>
      %75 = vector.broadcast %73 : vector<5x1xf32> to vector<5x256xf32>
      %76 = arith.mulf %75, %74 : vector<5x256xf32>
      %77 = arith.addf %72, %76 : vector<5x256xf32>
      %c2_43 = arith.constant 2 : index
      %c0_44 = arith.constant 0 : index
      %78 = vector.load %arg3[%c2_43, %c0_44] : memref<5x256xf32, #tpu.memory_space<vmem>>, vector<1x256xf32>
      %79 = vector.broadcast %78 : vector<1x256xf32> to vector<5x256xf32>
      %80 = arith.mulf %79, %77 : vector<5x256xf32>
      %81 = arith.addf %68, %80 : vector<5x256xf32>
      %c0_45 = arith.constant 0 : index
      %c3 = arith.constant 3 : index
      %82 = vector.load %arg2[%c0_45, %c3] : memref<5x10xf32, #tpu.memory_space<vmem>>, vector<5x1xf32>
      %83 = vector.extract_strided_slice %35 {offsets = [0, 3], sizes = [5, 256], strides = [1, 1]} : vector<5x260xf32> to vector<5x256xf32>
      %84 = vector.broadcast %82 : vector<5x1xf32> to vector<5x256xf32>
      %85 = arith.mulf %84, %83 : vector<5x256xf32>
      %c0_46 = arith.constant 0 : index
      %c8 = arith.constant 8 : index
      %86 = vector.load %arg2[%c0_46, %c8] : memref<5x10xf32, #tpu.memory_space<vmem>>, vector<5x1xf32>
      %87 = vector.extract_strided_slice %41 {offsets = [0, 3], sizes = [5, 256], strides = [1, 1]} : vector<5x260xf32> to vector<5x256xf32>
      %88 = vector.broadcast %86 : vector<5x1xf32> to vector<5x256xf32>
      %89 = arith.mulf %88, %87 : vector<5x256xf32>
      %90 = arith.addf %85, %89 : vector<5x256xf32>
      %c3_47 = arith.constant 3 : index
      %c0_48 = arith.constant 0 : index
      %91 = vector.load %arg3[%c3_47, %c0_48] : memref<5x256xf32, #tpu.memory_space<vmem>>, vector<1x256xf32>
      %92 = vector.broadcast %91 : vector<1x256xf32> to vector<5x256xf32>
      %93 = arith.mulf %92, %90 : vector<5x256xf32>
      %94 = arith.addf %81, %93 : vector<5x256xf32>
      %c0_49 = arith.constant 0 : index
      %c4 = arith.constant 4 : index
      %95 = vector.load %arg2[%c0_49, %c4] : memref<5x10xf32, #tpu.memory_space<vmem>>, vector<5x1xf32>
      %96 = vector.extract_strided_slice %35 {offsets = [0, 4], sizes = [5, 256], strides = [1, 1]} : vector<5x260xf32> to vector<5x256xf32>
      %97 = vector.broadcast %95 : vector<5x1xf32> to vector<5x256xf32>
      %98 = arith.mulf %97, %96 : vector<5x256xf32>
      %c0_50 = arith.constant 0 : index
      %c9 = arith.constant 9 : index
      %99 = vector.load %arg2[%c0_50, %c9] : memref<5x10xf32, #tpu.memory_space<vmem>>, vector<5x1xf32>
      %100 = vector.extract_strided_slice %41 {offsets = [0, 4], sizes = [5, 256], strides = [1, 1]} : vector<5x260xf32> to vector<5x256xf32>
      %101 = vector.broadcast %99 : vector<5x1xf32> to vector<5x256xf32>
      %102 = arith.mulf %101, %100 : vector<5x256xf32>
      %103 = arith.addf %98, %102 : vector<5x256xf32>
      %c4_51 = arith.constant 4 : index
      %c0_52 = arith.constant 0 : index
      %104 = vector.load %arg3[%c4_51, %c0_52] : memref<5x256xf32, #tpu.memory_space<vmem>>, vector<1x256xf32>
      %105 = vector.broadcast %104 : vector<1x256xf32> to vector<5x256xf32>
      %106 = arith.mulf %105, %103 : vector<5x256xf32>
      %107 = arith.addf %94, %106 : vector<5x256xf32>
      %cst_53 = arith.constant dense<0.000000e+00> : vector<256xf32>
      %108 = vector.multi_reduction <add>, %107, %cst_53 [0] : vector<5x256xf32> to vector<256xf32>
      %109 = vector.shape_cast %108 : vector<256xf32> to vector<1x256xf32>
      %cst_54 = arith.constant 0.000000e+00 : f32
      %110 = vector.broadcast %cst_54 : f32 to vector<1x256xf32>
      %111 = arith.maximumf %109, %110 : vector<1x256xf32>
      %112 = arith.negf %111 : vector<1x256xf32>
      %113 = math.exp %112 : vector<1x256xf32>
      %cst_55 = arith.constant 1.000000e+00 : f32
      %114 = vector.broadcast %cst_55 : f32 to vector<1x256xf32>
      %115 = arith.addf %114, %113 : vector<1x256xf32>
      %116 = arith.divf %114, %115 : vector<1x256xf32>
      %117 = arith.mulf %116, %111 : vector<1x256xf32>
      %c0_56 = arith.constant 0 : index
      %c0_57 = arith.constant 0 : index
      %c0_58 = arith.constant 0 : index
      %118 = vector.load %arg5[%c0_56, %c0_57, %c0_58] : memref<1x1x256xf32, #tpu.memory_space<vmem>>, vector<1x1x256xf32>
      %119 = vector.shape_cast %118 : vector<1x1x256xf32> to vector<1x256xf32>
      %120 = vector.shape_cast %117 : vector<1x256xf32> to vector<1x1x256xf32>
      tpu.vector_store %arg5[%c0_56, %c0_57, %c0_58], %120 {strides = array<i32>} : memref<1x1x256xf32, #tpu.memory_space<vmem>>, vector<1x1x256xf32>,
    } else {
    }
    return
  }
  func.func @transform_0(%arg0: i32, %arg1: i32) -> (i32, i32) {
    %c0_i32 = arith.constant 0 : i32
    %c0_i32_0 = arith.constant 0 : i32
    %c0_i32_1 = arith.constant 0 : i32
    return %c0_i32, %c0_i32_0 : i32, i32
  }
  func.func @transform_1(%arg0: i32, %arg1: i32) -> (i32, i32) {
    %c0_i32 = arith.constant 0 : i32
    %c0_i32_0 = arith.constant 0 : i32
    %c0_i32_1 = arith.constant 0 : i32
    return %c0_i32, %c0_i32_0 : i32, i32
  }
  func.func @transform_2(%arg0: i32, %arg1: i32) -> (i32, i32, i32) {
    %c0_i32 = arith.constant 0 : i32
    %c0_i32_0 = arith.constant 0 : i32
    return %arg0, %arg1, %c0_i32 : i32, i32, i32
  }
  func.func @transform_3(%arg0: i32, %arg1: i32) -> (i32, i32, i32) {
    %c0_i32 = arith.constant 0 : i32
    %c0_i32_0 = arith.constant 0 : i32
    %c0_i32_1 = arith.constant 0 : i32
    return %arg0, %c0_i32, %c0_i32_0 : i32, i32, i32
  }
}

</mosaic_0001>

<bundles_post_ra>
// kernel: tpu_custom_call.1
= control target key start
LH: loop header
LB: loop body
LE: loop exit
PB: predicated region body
PF: predicated region fallthrough
CT: control target
= control target key end

     0   :  { %8 = vsyncpa [#allocation6], 0  ;;  %s1614_s0 = inlined_call_operand.hbm [shape: f32[5,10], index: 0, kind: input, shape index: {}]   ;;  %s1615_s1 = inlined_call_operand.hbm [shape: f32[5,256], index: 1, kind: input, shape index: {}]   ;;  %s1616_s2 = inlined_call_operand.hbm [shape: f32[2,4,256], index: 2, kind: input, shape index: {}]   ;;  %s1617_s3 = inlined_call_operand.hbm [shape: f32[2,1,256], index: 3, kind: output, shape index: {}]  }
   0x1   :  { %9 = vsyncpa [#allocation9], 0 }
   0x2   :  { %10 = vsyncpa [#allocation7], 0 }
   0x3   :  { %12 = vsyncpa [#allocation7 + $0x1], 0  ;;  %s1249_s12 = smov 0   ;;  %s1251_s13 = smov 0  }
   0x4   :  { %s1253_s14 = smov 0   ;;  %s1255_s15 = smov 0  }
   0x5   :  { %s1257_s16 = smov 0   ;;  %s1259_s17 = smov 0  }
   0x6 LB: > { %s1280_s18 = sadd.s32 4294967295, %s1201_s17   ;;  %s887_s19 = sadd.s32 4294967294, %s1201_s17   ;;  %s1201_s17 = sphi %s1259_s17, %s18_s17   ;;  %s1197_s16 = sphi %s1257_s16, %s1642_s16   ;;  %s1193_s15 = sphi %s1255_s15, %s1641_s15   ;;  %s1189_s14 = sphi %s1253_s14, %s1640_s14   ;;  %s1185_s13 = sphi %s1251_s13, %s1639_s13   ;;  %s1181_s12 = sphi %s1249_s12, %s1638_s12  }
   0x7   : > { %p94_p0 = scmp.ne.s32.totalorder %s1185_s13, %s1181_s12  ;;  %p1618_p1 = scmp.eq.s32.totalorder %s1280_s18, 0 }
   0x8   : > { %p124_p3 = scmp.eq.s32.totalorder %s887_s19, 1  ;;  %p888_p5 = scmp.ge.s32.totalorder %s1201_s17, 1 }
   0x9   : > { %p1289_p4 = por %p1618_p1, %p94_p0  ;;  %p131_p7 = scmp.lt.s32.totalorder %s1201_s17, 3 }
   0xa   : > { %p1294_p6 = por %p124_p3, %p94_p0  ;;  %s1203_s23 = smov [#allocation5]  }
   0xb   : > { %s1621_s20 = scalar_select %p1289_p4, 1, 0 }
   0xc   : > { %s1622_s21 = scalar_select %p1294_p6, 1, 0 }
   0xd   : > { %p1299_p8 = pnand %p888_p5, %p131_p7  ;;  %s144_s24 = sshll.u32 %s1203_s23, 4  ;;  %s145_s24 = int_to_ptr.vmem [resolvable:$true] %s144_s24 }
   0xe   : > { %s1204_s25 = smov [#allocation8]   ;;  %s1044_s28 = scalar_lea.vmem %s145_s24, 128 }
   0xf   : > { %s1623_s22 = scalar_select %p1299_p8, 1, 0 }
  0x10   : > { %p921_p10 = pneg %p1299_p8  ;;  %s155_s26 = sshll.u32 %s1204_s25, 4  ;;  %s156_s26 = int_to_ptr.vmem [resolvable:$true] %s155_s26 }
  0x11   : > { %p1045_p13 = scmp.ne.s32.totalorder %s145_s24, %s1044_s28  ;;  %p1052_p5 = scmp.lt.s32.totalorder %s145_s24, %s145_s24 }
  0x12   : > { %p1308_p11 = pnand %p921_p10, %p1618_p1  ;;  %p1053_p7 = scmp.lt.s32.totalorder %s1044_s28, %s1044_s28 }
  0x14   : > { %p1035_p12 = pneg %p1308_p11  ;;  %p1054_p9 = por %p1053_p7, %p1052_p5 }
  0x16   : > { %p1047_p0 = pnand %p1045_p13, %p1035_p12 }
  0x18   : > { %p1048_p3 = pneg %p1047_p0 }
  0x1a   : > { %p1055_p2 = pnand %p1054_p9, %p1048_p3 }
  0x1c   : > { %1058 = shalt.err (!%p1055_p2)
}
  0x1d   : > { %924 = dma.hbm_to_vmem [thread:$0]  (!%p1308_p11), %s1614_s0, 128, %s145_s24, [#allocation6]  }
  0x1e   : > { %s1070_s4 = scalar_lea.vmem %s156_s26, 256  ;;  %p1078_p13 = scmp.lt.s32.totalorder %s156_s26, %s156_s26 }
  0x1f   : > { %p1071_p10 = scmp.ne.s32.totalorder %s156_s26, %s1070_s4  ;;  %p1079_p0 = scmp.lt.s32.totalorder %s1070_s4, %s1070_s4 }
  0x21   : > { %p1073_p1 = pnand %p1071_p10, %p1035_p12  ;;  %p1080_p4 = por %p1079_p0, %p1078_p13 }
  0x23   : > { %p1074_p6 = pneg %p1073_p1 }
  0x25   : > { %p1081_p8 = pnand %p1080_p4, %p1074_p6 }
  0x27   : > { %1084 = shalt.err (!%p1081_p8)
}
  0x28   : > { %927 = dma.hbm_to_vmem [thread:$0]  (!%p1308_p11), %s1615_s1, 256, %s156_s26, [#allocation9]  }
  0x29   : > { %s30_s7 = sadd.s32 1, %s1197_s16  ;;  %s81_s8 = sadd.s32 1, %s1189_s14 }
  0x2a   : > { %p32_p1 = scmp.ge.s32.totalorder %s30_s7, 2  ;;  %p88_p2 = scmp.ne.s32.totalorder %s1189_s14, %s1185_s13 }
  0x2b   : > { %p89_p4 = scmp.eq.s32.totalorder %s1201_s17, 0  ;;  %p938_p6 = scmp.lt.s32.totalorder %s1201_s17, 2 }
  0x2c   : > { %s1644_s7 = smov (%p32_p1, %s30_s7), 0  ;;  %p1625_p9 = scmp.eq.s32.totalorder %s1280_s18, 1 }
  0x2d   : > { %p90_p8 = por %p89_p4, %p88_p2  ;;  %s76_s10 = ssub.s32 %s1197_s16, %s1644_s7 }
  0x2e   : > { %p1340_p12 = por %p1625_p9, %p88_p2  ;;  %s166_s11 = sand.u32 1, %s1201_s17  }
  0x2f   : > { %p79_p3 = scmp.eq.s32.totalorder %s76_s10, 0  ;;  %s168_s19 = sand.u32 1, %s1189_s14  }
  0x30   : > { %s907_s23 = sshll.u32 %s1197_s16, 7  ;;  %s892_s25 = sshll.u32 %s168_s19, 3 }
  0x31   : > { %s1350_s24 = scalar_select %p79_p3, %s1189_s14, %s81_s8  }
  0x32   : > { %s178_s28 = scalar_lea.hbm %s1616_s2, %s907_s23  ;;  %p1355_p11 = pnand %p938_p6, %p90_p8 }
  0x33   : > { %s170_s30 = scalar_lea.vmem [#allocation10], %s892_s25  ;;  %s167_s5 = scalar_lea.sflag [#allocation6], %s166_s11 }
  0x34   : > { %s180_s4 = sshll.u32 %s170_s30, 4  ;;  %p1087_p5 = pneg %p1355_p11  ;;  %s181_s4 = int_to_ptr.vmem [resolvable:$true] %s180_s4 }
  0x35   : > { %s1098_s6 = scalar_lea.vmem %s181_s4, 128  ;;  %s1205_s8 = smov [#allocation10]  }
  0x36   : > { %p1099_p7 = scmp.ne.s32.totalorder %s181_s4, %s1098_s6  ;;  %s1103_s10 = sshll.u32 %s1205_s8, 4  ;;  %s1104_s10 = int_to_ptr.vmem [resolvable:$false] %s1103_s10 }
  0x37   : > { %s1105_s19 = scalar_lea.vmem %s1104_s10, 256  ;;  %p1106_p0 = scmp.lt.s32.totalorder %s181_s4, %s1104_s10 }
  0x38   : > { %p1101_p10 = pnand %p1099_p7, %p1087_p5  ;;  %p1107_p1 = scmp.lt.s32.totalorder %s1105_s19, %s1098_s6 }
  0x3a   : > { %p1102_p13 = pneg %p1101_p10  ;;  %p1108_p2 = por %p1107_p1, %p1106_p0 }
  0x3c   : > { %p1109_p4 = pnand %p1108_p2, %p1102_p13 }
  0x3e   : > { %1112 = shalt.err (!%p1109_p4)
}
  0x3f   : > { %931 = dma.hbm_to_vmem [thread:$0]  (!%p1355_p11), %s178_s28, 128, %s181_s4, %s167_s5  }
  0x40   : > { %p1628_p6 = scmp.ne.s32.totalorder %s1623_s22, 0 }
  0x41   : > { %p1629_p8 = scmp.eq.s32.totalorder (!%p1628_p6), %s1280_s18, 0 }
  0x42   : > { %189 = sbr.rel (%p1628_p6) target bundleno = 622 (0x26e), region = 32 }
  0x47   : > { %1164 = dma.done.wait (%p1629_p8), [#allocation6], 128   ;;  %p1630_p9 = pmov %p1629_p8 }
  0x48   : > { %p1631_p3 = pmov %p1629_p8 }
  0x49   : > { %1166 = vsyncadd (%p1630_p9), [#allocation6], 4294967168 }
  0x4a   : > { %1168 = dma.done.wait (%p1631_p3), [#allocation9], 256   ;;  %p1632_p5 = pmov %p1631_p3 }
  0x4b   : > { %s199_s11 = sand.u32 1, %s1280_s18   ;;  %s1375_s23 = sand.u32 1, %s1185_s13  }
  0x4c   : > { %1170 = vsyncadd (%p1632_p5), [#allocation9], 4294967040  ;;  %s898_s22 = sshll.u32 %s1375_s23, 3  ;;  %s200_s25 = scalar_lea.sflag [#allocation6], %s199_s11 }
  0x4d   : > { %s203_s26 = scalar_lea.vmem [#allocation10], %s898_s22  ;;  %p1633_p11 = scmp.ne.s32.totalorder %s1621_s20, 0 }
  0x4f   : > { %1172 = dma.done.wait (%p1633_p11), %s200_s25, 128  }
  0x50   : > { %1174 = vsyncadd (%p1633_p11), %s200_s25, 4294967168  ;;  %v230_v0 = vlaneseq  ;;  %v1206_v2 = vmov 6   ;;  %v1207_v3 = vmov 1   ;;  %v1208_v4 = vmov -inf   ;;  %v236_v6 = vld [vmem:[%s203_s26] sm:$0xff]  ;;  %s1213_s18 = smov 34  }
  0x51   : > { %1015 = vset.pattern.permute.xlu1 %v1206_v2  ;;  %1014 = vset.pattern.permute.xlu0 %v1207_v3  ;;  %v1209_v5 = vmov 0.0   ;;  %vm318_vm1 = vcmask 271360   ;;  %vm320_vm2 = vcmask 550160   ;;  %vm240_vm3 = vcmask 1043456   ;;  %v1391_v7 = vld [vmem:[#allocation5] sm:$0x1f] }
  0x52   : > { %vm1383_vm0 = vcmp.lt.s32.totalorder %v230_v0, 256  ;;  %319 = vst.msk [vmem:[#allocation4] sm:$0x3] %vm318_vm1, %v1209_v5  ;;  %v238_v8 = vcombine.high %v236_v6, %v236_v6  ;;  %v241_v9 = vsel %vm240_vm3, %v236_v6, -inf  ;;  %v255_v10 = vsel %vm240_vm3, %v236_v6, 0.0  ;;  %537 = vperm.xlu1 %1015, %v1391_v7   ;;  %s1218_s20 = smov 112  }
  0x53   : > { %234 = vst.msk [vmem:[#allocation2] sm:$0x3] %vm1383_vm0, %v1208_v4  ;;  %235 = vst.msk [vmem:[#allocation3] sm:$0x3] %vm1383_vm0, %v1209_v5  ;;  %v242_v11 = vrot.slane %v241_v9, 4  ;;  %v256_v12 = vrot.slane %v255_v10, 4 }
  0x54   : > { %321 = vst.msk [vmem:[#allocation4 + $0x4] sm:$0x3] %vm320_vm2, %v1209_v5  ;;  %v248_v13 = vsel %vm240_vm3, %v238_v8, -inf  ;;  %v262_v14 = vsel %vm240_vm3, %v238_v8, 0.0  ;;  %v1210_v19 = vmov 1966171168  }
  0x55   : > { %v243_v15 = vmax.f32 %v241_v9, %v242_v11  ;;  %v249_v16 = vrot.slane %v248_v13, 4  ;;  %v257_v17 = vadd.f32 %v256_v12, %v255_v10  ;;  %v263_v18 = vrot.slane %v262_v14, 4  ;;  %s1219_s27 = smov 96   ;;  %s1220_s28 = smov 80  }
  0x56   : > { %v274_v20 = vunpack.c.l.s4 %v1210_v19  ;;  %v1211_v21 = vmov 2   ;;  %v1400_v31 = vshrl.u32 %v230_v0, 7  ;;  %v1212_v36 = vmov 8   ;;  %s1221_s29 = smov 64   ;;  %s1224_s30 = smov 126  }
  0x57   : > { %1016 = vset.pattern.permute.xlu1 %v1211_v21  ;;  %v244_v22 = vrot.slane %v243_v15, 2  ;;  %v250_v23 = vmax.f32 %v248_v13, %v249_v16  ;;  %v258_v24 = vrot.slane %v257_v17, 2  ;;  %v264_v25 = vadd.f32 %v263_v18, %v262_v14  ;;  %s1225_s4 = smov 127   ;;  %s1226_s5 = smov 125  }
  0x58   : > { %578 = vperm.xlu1 %1016, %v1391_v7   ;;  %v275_v30 = vunpack.c.0.s8 %v274_v20  ;;  %v1214_v57 = vmov 7   ;;  %v1215_v58 = vmov 3   ;;  %v1216_v59 = vmov 9   ;;  %s1227_s6 = smov 124   ;;  %s899_s8 = sshll.u32 %s1375_s23, 1 }
  0x59   : > { %v245_v26 = vmax.f32 %v243_v15, %v244_v22  ;;  %v251_v27 = vrot.slane %v250_v23, 2  ;;  %v259_v28 = vadd.f32 %v258_v24, %v257_v17  ;;  %v265_v29 = vrot.slane %v264_v25, 2  ;;  %s908_s10 = sshll.u32 %s1193_s15, 5  ;;  %s225_s19 = scalar_lea.vmem [#allocation11], %s899_s8 }
  0x5a   : > { %v1404_v42 = vsub.s32 %v275_v30, %v1400_v31  ;;  %v269_v48 = vld [vmem:[#allocation2] sm:$0x3]  ;;  %v294_v49 = vld [vmem:[#allocation3] sm:$0x3]  ;;  %v1217_v60 = vmov 4   ;;  %vm330_vm4 = vcmp.ge.s32.totalorder %v230_v0, 34  ;;  %s784_s26 = scalar_lea.hbm %s1617_s3, %s908_s10 }
  0x5b   : > { %v246_v32 = vrot.slane %v245_v26, 1  ;;  %v252_v33 = vmax.f32 %v250_v23, %v251_v27  ;;  %v260_v34 = vrot.slane %v259_v28, 1  ;;  %v266_v35 = vadd.f32 %v265_v29, %v264_v25  ;;  %s786_s11 = sshll.u32 %s225_s19, 4  ;;  %s1228_s15 = smov [#allocation11]   ;;  %s787_s11 = int_to_ptr.vmem [resolvable:$true] %s786_s11 }
  0x5c   : > { %1019 = vset.pattern.permute.xlu1 %v1212_v36  ;;  %vm331_vm5 = vcmp.lt.s32.totalorder %v230_v0, 290  ;;  %vm327_vm6 = vcmask 277504   ;;  %v357_v5 = vsub.s32 2, %v1400_v31  ;;  %v1421_v6 = vsub.s32 0, %v1400_v31 }
  0x5d   : > { %633 = vperm.xlu1 %1019, %v1391_v7   ;;  %v247_v37 = vmax.f32 %v245_v26, %v246_v32  ;;  %v253_v38 = vrot.slane %v252_v33, 1  ;;  %v261_v39 = vadd.f32 %v260_v34, %v259_v28  ;;  %v267_v40 = vrot.slane %v266_v35, 1  ;;  %vm332_vm7 = vmand %vm330_vm4, %vm331_vm5 }
  0x5e   : > { %v1429_v10 = vsub.s32 1, %v1400_v31  ;;  %v1222_v16 = vmov 0   ;;  %v1223_v17 = vmov 5   ;;  %vm410_vm8 = vcmask 1040384  }
  0x5f   : > { %v254_v41 = vmax.f32 %v252_v33, %v253_v38  ;;  %v268_v43 = vadd.f32 %v267_v40, %v266_v35  ;;  %vm368_vm9 = vcmask 916480   ;;  %vm414_vm10 = vcmask 1041408  }
  0x60   : > { %vm418_vm11 = vcmask 1042432   ;;  %vm380_vm12 = vcmask 785408   ;;  %vm392_vm13 = vcmask 654336   ;;  %vm404_vm14 = vcmask 523264  }
  0x61   : > { %v272_v44 = vcombine.low %v247_v37, %v254_v41  ;;  %v297_v45 = vcombine.low %v261_v39, %v268_v43  ;;  %1020 = vset.pattern.permute.xlu1 %v1217_v60  ;;  %vm568_vm15 = vcmask 1039360   ;;  %vm616_vm1 = vcmask 1031168  }
  0x62   : > { %vm664_vm2 = vcmask 1022976   ;;  %vm721_vm4 = vcmask 1044480  }
  0x63   : > { %v279_v46 = vrot.slane %v272_v44, %v1404_v42  ;;  %v304_v47 = vrot.slane %v297_v45, %v1404_v42 }
  0x65   : > { %v286_v50 = vrot.slane %v279_v46, %v1404_v42  ;;  %v311_v51 = vrot.slane %v304_v47, %v1404_v42 }
  0x67   : > { %v288_v52 = vmax.f32 %v269_v48, %v286_v50  ;;  %v313_v53 = vadd.f32 %v311_v51, %v294_v49 }
  0x69   : > { %293 = vst.msk [vmem:[#allocation2] sm:$0x3] %vm1383_vm0, %v288_v52  ;;  %314 = vst.msk [vmem:[#allocation3] sm:$0x3] %vm1383_vm0, %v313_v53 }
  0x70   : > { %v322_v54 = vld [vmem:[#allocation2] sm:$0x3]  ;;  %v334_v55 = vld [vmem:[#allocation3] sm:$0x3] }
  0x71   : > { %324 = vrot.lane.b32.xlu0 %v322_v54, %s1213_s18  ;;  %v335_v56 = vmul.f32 0.25, %v334_v55 }
  0x75   : > { %337 = vrot.lane.b32.xlu0 %v335_v56, %s1213_s18  ;;  %s772_s18 = scalar_lea.sflag [#allocation7], %s1375_s23 }
  0x79   : > { %530 = vperm.xlu0 %1014, %v1391_v7  }
  0x7d   : > { %1017 = vset.pattern.permute.xlu0 %v1214_v57 }
  0x7e   : > { %585 = vperm.xlu0 %1017, %v1391_v7  }
  0x82   : > { %1018 = vset.pattern.permute.xlu0 %v1215_v58 }
  0x83   : > { %626 = vperm.xlu0 %1018, %v1391_v7  }
  0x87   : > { %1021 = vset.pattern.permute.xlu0 %v1216_v59 }
  0xcd   : > { %v1464_v18 = vpop.permute.xlu1 %537 }
  0xd3   : > { %v1468_v20 = vpop.permute.xlu1 %578 }
  0xd8   : > { %v1472_v22 = vpop.permute.xlu1 %633 }
  0xe3   : > { %v325_v61 = vpop.permute.xlu0 %324 }
  0xe4   : > { %v326_v62 = vrot.slane %v325_v61, 7 }
  0xe6   : > { %v328_v63 = vsel %vm327_vm6, %v326_v62, %v325_v61 }
  0xe7   : > { %333 = vst.msk [vmem:[#allocation4] ss:$2 sm:$0x7] %vm332_vm7, %v328_v63  ;;  %v338_v2 = vpop.permute.xlu0 %337 }
  0xe8   : > { %v339_v3 = vrot.slane %v338_v2, 7 }
  0xea   : > { %v340_v4 = vsel %vm327_vm6, %v339_v3, %v338_v2 }
  0xeb   : > { %343 = vst.msk [vmem:[#allocation4 + $0x1] ss:$2 sm:$0x7] %vm332_vm7, %v340_v4 }
  0xee   : > { %v344_v8 = vld [vmem:[#allocation4] ss:$2 sm:$0x7] }
  0xef   : > { %v1423_v9 = vrot.slane %v344_v8, %v357_v5  ;;  %v1426_v0 = vrot.slane %v344_v8, %v1421_v6  ;;  %v1434_v11 = vrot.slane %v344_v8, %v1429_v10 }
  0xf1   : > { %366 = vrot.lane.b32.xlu0 %v1423_v9, %s1218_s20  ;;  %362 = vrot.lane.b32.xlu1 %v1426_v0, %s1218_s20 }
  0xf2   : > { %v345_v12 = vld [vmem:[#allocation4 + $0x1] ss:$2 sm:$0x7] }
  0xf3   : > { %v1443_v13 = vrot.slane %v345_v12, %v1429_v10  ;;  %v1448_v14 = vrot.slane %v345_v12, %v1421_v6  ;;  %v437_v15 = vrot.slane %v345_v12, %v357_v5 }
  0xf4   : > { %v1466_v19 = vpop.permute.xlu0 %530 }
  0xf5   : > { %376 = vrot.lane.b32.xlu0 %v1434_v11, %s1219_s27  ;;  %364 = vrot.lane.b32.xlu1 %v1434_v11, %s1218_s20 }
  0xf9   : > { %388 = vrot.lane.b32.xlu0 %v1434_v11, %s1220_s28  ;;  %374 = vrot.lane.b32.xlu1 %v1426_v0, %s1219_s27  ;;  %v1470_v21 = vpop.permute.xlu0 %585 }
  0xfd   : > { %402 = vrot.lane.b32.xlu0 %v1423_v9, %s1221_s29  ;;  %378 = vrot.lane.b32.xlu1 %v1423_v9, %s1219_s27 }
  0xfe   : > { %v1474_v23 = vpop.permute.xlu0 %626 }
 0x101   : > { %386 = vrot.lane.b32.xlu1 %v1426_v0, %s1220_s28  ;;  %443 = vrot.lane.b32.xlu0 %v1443_v13, %s1218_s20 }
 0x105   : > { %390 = vrot.lane.b32.xlu1 %v1423_v9, %s1220_s28  ;;  %452 = vrot.lane.b32.xlu0 %v1448_v14, %s1219_s27 }
 0x109   : > { %398 = vrot.lane.b32.xlu1 %v1426_v0, %s1221_s29  ;;  %456 = vrot.lane.b32.xlu0 %v437_v15, %s1219_s27 }
 0x10d   : > { %400 = vrot.lane.b32.xlu1 %v1434_v11, %s1221_s29  ;;  %463 = vrot.lane.b32.xlu0 %v1448_v14, %s1220_s28 }
 0x111   : > { %467 = vrot.lane.b32.xlu0 %v437_v15, %s1220_s28  ;;  %441 = vrot.lane.b32.xlu1 %v1448_v14, %s1218_s20 }
 0x115   : > { %476 = vrot.lane.b32.xlu0 %v1443_v13, %s1221_s29  ;;  %445 = vrot.lane.b32.xlu1 %v437_v15, %s1218_s20  ;;  %s1113_s20 = scalar_lea.vmem %s787_s11, 32 }
 0x116   : > { %p1114_p7 = scmp.ne.s32.totalorder %s787_s11, %s1113_s20 }
 0x118   : > { %p1115_p10 = pnand %p1114_p7, %p1340_p12 }
 0x119   : > { %454 = vrot.lane.b32.xlu1 %v1443_v13, %s1219_s27  ;;  %681 = vperm.xlu0 %1021, %v1391_v7   ;;  %s1117_s27 = sshll.u32 %s1228_s15, 4  ;;  %s1118_s27 = int_to_ptr.vmem [resolvable:$false] %s1117_s27 }
 0x11a   : > { %p1116_p13 = pneg %p1115_p10  ;;  %p1120_p0 = scmp.lt.s32.totalorder %s787_s11, %s1118_s27 }
 0x11d   : > { %465 = vrot.lane.b32.xlu1 %v1443_v13, %s1220_s28  ;;  %s1119_s28 = scalar_lea.vmem %s1118_s27, 64 }
 0x11e   : > { %p1121_p1 = scmp.lt.s32.totalorder %s1119_s28, %s1113_s20 }
 0x120   : > { %p1122_p2 = por %p1121_p1, %p1120_p0 }
 0x121   : > { %474 = vrot.lane.b32.xlu1 %v1448_v14, %s1221_s29 }
 0x122   : > { %p1123_p4 = pnand %p1122_p2, %p1116_p13 }
 0x125   : > { %478 = vrot.lane.b32.xlu1 %v437_v15, %s1221_s29 }
 0x129   : > { %674 = vperm.xlu1 %1020, %v1391_v7  }
 0x12d   : > { %1022 = vset.pattern.permute.xlu1 %v1222_v16 }
 0x12e   : > { %500 = vperm.xlu1 %1022, %v1391_v7  }
 0x132   : > { %1023 = vset.pattern.permute.xlu1 %v1223_v17 }
 0x133   : > { %506 = vperm.xlu1 %1023, %v1391_v7  }
 0x163   : > { %v363_v24 = vpop.permute.xlu1 %362  ;;  %v367_v25 = vpop.permute.xlu0 %366 }
 0x164   : > { %v413_v43 = vsel %vm410_vm8, %v1423_v9, %v367_v25 }
 0x167   : > { %v365_v26 = vpop.permute.xlu1 %364  ;;  %v377_v27 = vpop.permute.xlu0 %376 }
 0x168   : > { %v369_v46 = vsel %vm368_vm9, %v363_v24, %v365_v26  ;;  %v370_v47 = vsel %vm368_vm9, %v365_v26, %v367_v25 }
 0x169   : > { %v411_v53 = vsel %vm410_vm8, %v1426_v0, %v369_v46  ;;  %v412_v54 = vsel %vm410_vm8, %v1434_v11, %v370_v47 }
 0x16b   : > { %v375_v28 = vpop.permute.xlu1 %374  ;;  %v1476_v29 = vpop.permute.xlu0 %388 }
 0x16c   : > { %v381_v62 = vsel %vm380_vm12, %v375_v28, %v377_v27 }
 0x16f   : > { %v379_v7 = vpop.permute.xlu1 %378  ;;  %v403_v30 = vpop.permute.xlu0 %402 }
 0x170   : > { %v417_v44 = vsel %vm414_vm10, %v413_v43, %v379_v7  ;;  %v382_v49 = vsel %vm380_vm12, %v377_v27, %v379_v7 }
 0x171   : > { %v416_v58 = vsel %vm414_vm10, %v412_v54, %v382_v49 }
 0x173   : > { %v387_v31 = vpop.permute.xlu1 %386  ;;  %v444_v33 = vpop.permute.xlu0 %443 }
 0x177   : > { %v391_v32 = vpop.permute.xlu1 %390  ;;  %v453_v35 = vpop.permute.xlu0 %452 }
 0x178   : > { %v421_v48 = vsel %vm418_vm11, %v417_v44, %v391_v32  ;;  %v394_v52 = vsel %vm392_vm13, %v1476_v29, %v391_v32 }
 0x179   : > { %v1493_v55 = vsel %vm240_vm3, %v421_v48, %v403_v30  ;;  %v420_v63 = vsel %vm418_vm11, %v416_v58, %v394_v52 }
 0x17a   : > { %v583_v8 = vmul.f32 %v1468_v20, %v1493_v55  ;;  %v535_v9 = vmul.f32 %v1466_v19, %v1493_v55 }
 0x17b   : > { %v399_v34 = vpop.permute.xlu1 %398  ;;  %v457_v38 = vpop.permute.xlu0 %456 }
 0x17f   : > { %v401_v36 = vpop.permute.xlu1 %400  ;;  %v464_v40 = vpop.permute.xlu0 %463 }
 0x180   : > { %v406_v4 = vsel %vm404_vm14, %v401_v36, %v403_v30  ;;  %v393_v30 = vsel %vm392_vm13, %v387_v31, %v1476_v29  ;;  %v405_v32 = vsel %vm404_vm14, %v399_v34, %v401_v36  ;;  %v631_v29 = vmul.f32 %v1474_v23, %v1493_v55 }
 0x183   : > { %v442_v37 = vpop.permute.xlu1 %441  ;;  %v468_v50 = vpop.permute.xlu0 %467 }
 0x184   : > { %v447_v59 = vsel %vm368_vm9, %v442_v37, %v444_v33 }
 0x185   : > { %v485_v0 = vsel %vm410_vm8, %v1448_v14, %v447_v59 }
 0x187   : > { %v446_v39 = vpop.permute.xlu1 %445  ;;  %v477_v11 = vpop.permute.xlu0 %476 }
 0x188   : > { %v487_v51 = vsel %vm410_vm8, %v437_v15, %v446_v39  ;;  %v448_v56 = vsel %vm368_vm9, %v444_v33, %v446_v39  ;;  %v423_v33 = vsel %vm240_vm3, %v420_v63, %v406_v4 }
 0x189   : > { %v490_v60 = vsel %vm414_vm10, %v487_v51, %v457_v38  ;;  %v486_v5 = vsel %vm410_vm8, %v1443_v13, %v448_v56  ;;  %v534_v31 = vmul.f32 %v1466_v19, %v423_v33  ;;  %v582_v56 = vmul.f32 %v1468_v20, %v423_v33 }
 0x18a   : > { %v493_v17 = vsel %vm418_vm11, %v490_v60, %v468_v50 }
 0x18b   : > { %v455_v41 = vpop.permute.xlu1 %454 }
 0x18c   : > { %v459_v61 = vsel %vm380_vm12, %v455_v41, %v457_v38  ;;  %v458_v2 = vsel %vm380_vm12, %v453_v35, %v455_v41  ;;  %v415_v41 = vsel %vm414_vm10, %v411_v53, %v381_v62 }
 0x18d   : > { %v489_v12 = vsel %vm414_vm10, %v486_v5, %v459_v61  ;;  %v488_v24 = vsel %vm414_vm10, %v485_v0, %v458_v2  ;;  %v419_v44 = vsel %vm418_vm11, %v415_v41, %v393_v30 }
 0x18e   : > { %v422_v34 = vsel %vm240_vm3, %v419_v44, %v405_v32  ;;  %v643_v44 = vld [vmem:[#allocation8 + $0x3] ss:$8 sm:$0x3] }
 0x18f   : > { %v466_v45 = vpop.permute.xlu1 %465  ;;  %v581_v48 = vmul.f32 %v1468_v20, %v422_v34  ;;  %v533_v49 = vmul.f32 %v1466_v19, %v422_v34 }
 0x190   : > { %v470_v3 = vsel %vm392_vm13, %v466_v45, %v468_v50  ;;  %v469_v15 = vsel %vm392_vm13, %v464_v40, %v466_v45 }
 0x191   : > { %v492_v13 = vsel %vm418_vm11, %v489_v12, %v470_v3  ;;  %v491_v35 = vsel %vm418_vm11, %v488_v24, %v469_v15 }
 0x193   : > { %v475_v57 = vpop.permute.xlu1 %474 }
 0x194   : > { %v480_v27 = vsel %vm404_vm14, %v475_v57, %v477_v11  ;;  %v682_v57 = vpop.permute.xlu0 %681 }
 0x195   : > { %v494_v43 = vsel %vm240_vm3, %v491_v35, %v480_v27  ;;  %v595_v27 = vld [vmem:[#allocation8 + $0x2] ss:$8 sm:$0x3] }
 0x196   : > { %v588_v46 = vmul.f32 %v1470_v21, %v494_v43  ;;  %v540_v47 = vmul.f32 %v1464_v18, %v494_v43  ;;  %v636_v60 = vmul.f32 %v1472_v22, %v494_v43  ;;  %v684_v61 = vmul.f32 %v682_v57, %v494_v43 }
 0x197   : > { %v479_v16 = vpop.permute.xlu1 %478  ;;  %v604_v35 = vrot.slane %v595_v27, %v1429_v10  ;;  %v600_v41 = vrot.slane %v595_v27, %v1421_v6 }
 0x198   : > { %v481_v25 = vsel %vm404_vm14, %v477_v11, %v479_v16  ;;  %v496_v26 = vsel %vm240_vm3, %v493_v17, %v479_v16  ;;  %v591_v50 = vadd.f32 %v588_v46, %v581_v48  ;;  %v543_v51 = vadd.f32 %v540_v47, %v533_v49  ;;  %v691_v47 = vld [vmem:[#allocation8 + $0x4] ss:$8 sm:$0x3] }
 0x199   : > { %v1522_v14 = vsel %vm240_vm3, %v492_v13, %v481_v25  ;;  %v542_v28 = vmul.f32 %v1464_v18, %v496_v26  ;;  %v590_v7 = vmul.f32 %v1470_v21, %v496_v26  ;;  %v638_v37 = vmul.f32 %v1472_v22, %v496_v26  ;;  %v547_v25 = vld [vmem:[#allocation8 + $0x1] ss:$8 sm:$0x3] }
 0x19a   : > { %v541_v40 = vmul.f32 %v1464_v18, %v1522_v14  ;;  %v637_v52 = vmul.f32 %v1472_v22, %v1522_v14  ;;  %v589_v53 = vmul.f32 %v1470_v21, %v1522_v14  ;;  %v630_v18 = vmul.f32 %v1474_v23, %v423_v33 }
 0x19b   : > { %v593_v38 = vadd.f32 %v590_v7, %v583_v8  ;;  %v545_v39 = vadd.f32 %v542_v28, %v535_v9  ;;  %v641_v36 = vadd.f32 %v638_v37, %v631_v29  ;;  %v629_v21 = vmul.f32 %v1474_v23, %v422_v34 }
 0x19c   : > { %v544_v45 = vadd.f32 %v541_v40, %v534_v31  ;;  %v640_v59 = vadd.f32 %v637_v52, %v630_v18  ;;  %v592_v19 = vadd.f32 %v589_v53, %v582_v56  ;;  %v686_v5 = vmul.f32 %v682_v57, %v496_v26  ;;  %v513_v26 = vld [vmem:[#allocation8] ss:$8 sm:$0x3] }
 0x19d   : > { %614 = vrot.lane.b32.xlu1 %v593_v38, %s1224_s30  ;;  %566 = vrot.lane.b32.xlu0 %v545_v39, %s1225_s4  ;;  %v639_v3 = vadd.f32 %v636_v60, %v629_v21  ;;  %v685_v20 = vmul.f32 %v682_v57, %v1522_v14  ;;  %v556_v28 = vrot.slane %v547_v25, %v1429_v10  ;;  %vm712_vm3 = vcmask 1014784  }
 0x19e   : > { %v518_v38 = vrot.slane %v513_v26, %v1421_v6  ;;  %v648_v46 = vrot.slane %v643_v44, %v1421_v6  ;;  %v696_v56 = vrot.slane %v691_v47, %v1421_v6 }
 0x1a1   : > { %662 = vrot.lane.b32.xlu0 %v641_v36, %s1226_s5  ;;  %564 = vrot.lane.b32.xlu1 %v544_v45, %s1225_s4 }
 0x1a4   : > { %v675_v54 = vpop.permute.xlu1 %674 }
 0x1a5   : > { %610 = vrot.lane.b32.xlu1 %v591_v50, %s1224_s30  ;;  %562 = vrot.lane.b32.xlu0 %v543_v51, %s1225_s4  ;;  %v677_v58 = vmul.f32 %v675_v54, %v422_v34  ;;  %v678_v63 = vmul.f32 %v675_v54, %v423_v33  ;;  %v679_v2 = vmul.f32 %v675_v54, %v1493_v55 }
 0x1a6   : > { %v652_v50 = vrot.slane %v643_v44, %v1429_v10 }
 0x1a7   : > { %v687_v4 = vadd.f32 %v684_v61, %v677_v58  ;;  %v688_v22 = vadd.f32 %v685_v20, %v678_v63  ;;  %v689_v9 = vadd.f32 %v686_v5, %v679_v2 }
 0x1a9   : > { %v501_v62 = vpop.permute.xlu1 %500  ;;  %660 = vrot.lane.b32.xlu1 %v640_v59, %s1226_s5  ;;  %612 = vrot.lane.b32.xlu0 %v592_v19, %s1224_s30  ;;  %v700_v19 = vrot.slane %v691_v47, %v1429_v10 }
 0x1aa   : > { %v503_v0 = vmul.f32 %v501_v62, %v422_v34  ;;  %v504_v11 = vmul.f32 %v501_v62, %v423_v33  ;;  %v522_v33 = vrot.slane %v513_v26, %v1429_v10 }
 0x1ad   : > { %658 = vrot.lane.b32.xlu0 %v639_v3, %s1226_s5  ;;  %706 = vrot.lane.b32.xlu1 %v687_v4, %s1227_s6 }
 0x1ae   : > { %v507_v8 = vpop.permute.xlu1 %506 }
 0x1af   : > { %v509_v12 = vmul.f32 %v507_v8, %v494_v43  ;;  %v510_v15 = vmul.f32 %v507_v8, %v1522_v14  ;;  %v552_v14 = vrot.slane %v547_v25, %v1421_v6 }
 0x1b1   : > { %v511_v23 = vadd.f32 %v509_v12, %v503_v0  ;;  %v512_v16 = vadd.f32 %v510_v15, %v504_v11  ;;  %708 = vrot.lane.b32.xlu0 %v688_v22, %s1227_s6  ;;  %710 = vrot.lane.b32.xlu1 %v689_v9, %s1227_s6 }
 0x1b3   : > { %v526_v34 = vmul.f32 %v522_v33, %v512_v16  ;;  %v525_v48 = vmul.f32 %v518_v38, %v511_v23 }
 0x20f   : > { %v615_v55 = vpop.permute.xlu1 %614  ;;  %v567_v17 = vpop.permute.xlu0 %566 }
 0x213   : > { %v565_v24 = vpop.permute.xlu1 %564  ;;  %v663_v13 = vpop.permute.xlu0 %662 }
 0x214   : > { %v570_v32 = vsel %vm568_vm15, %v565_v24, %v567_v17 }
 0x215   : > { %v574_v39 = vmul.f32 %v570_v32, %v556_v28 }
 0x217   : > { %v611_v7 = vpop.permute.xlu1 %610  ;;  %v563_v30 = vpop.permute.xlu0 %562  ;;  %v576_v49 = vadd.f32 %v574_v39, %v526_v34 }
 0x218   : > { %v569_v37 = vsel %vm568_vm15, %v563_v30, %v565_v24 }
 0x219   : > { %v573_v36 = vmul.f32 %v569_v37, %v552_v14 }
 0x21b   : > { %v661_v40 = vpop.permute.xlu1 %660  ;;  %v613_v43 = vpop.permute.xlu0 %612  ;;  %v575_v57 = vadd.f32 %v573_v36, %v525_v48 }
 0x21c   : > { %v617_v29 = vsel %vm616_vm1, %v611_v7, %v613_v43  ;;  %v618_v31 = vsel %vm616_vm1, %v613_v43, %v615_v55  ;;  %v666_v54 = vsel %vm664_vm2, %v661_v40, %v663_v13 }
 0x21d   : > { %v622_v45 = vmul.f32 %v618_v31, %v604_v35  ;;  %v621_v51 = vmul.f32 %v617_v29, %v600_v41  ;;  %v670_v60 = vmul.f32 %v666_v54, %v652_v50 }
 0x21f   : > { %v707_v52 = vpop.permute.xlu1 %706  ;;  %v659_v53 = vpop.permute.xlu0 %658  ;;  %v624_v58 = vadd.f32 %v622_v45, %v576_v49  ;;  %v623_v61 = vadd.f32 %v621_v51, %v575_v57 }
 0x220   : > { %v665_v18 = vsel %vm664_vm2, %v659_v53, %v661_v40 }
 0x221   : > { %v669_v59 = vmul.f32 %v665_v18, %v648_v46  ;;  %v672_v4 = vadd.f32 %v670_v60, %v624_v58 }
 0x223   : > { %v711_v62 = vpop.permute.xlu1 %710  ;;  %v709_v21 = vpop.permute.xlu0 %708  ;;  %v671_v3 = vadd.f32 %v669_v59, %v623_v61 }
 0x224   : > { %v713_v63 = vsel %vm712_vm3, %v707_v52, %v709_v21  ;;  %v714_v2 = vsel %vm712_vm3, %v709_v21, %v711_v62 }
 0x225   : > { %v717_v5 = vmul.f32 %v713_v63, %v696_v56  ;;  %v718_v20 = vmul.f32 %v714_v2, %v700_v19 }
 0x227   : > { %v719_v8 = vadd.f32 %v717_v5, %v671_v3  ;;  %v720_v22 = vadd.f32 %v718_v20, %v672_v4 }
 0x229   : > { %v722_v6 = vsel %vm721_vm4, %v719_v8, 0.0  ;;  %v729_v9 = vsel %vm721_vm4, %v720_v22, 0.0 }
 0x22a   : > { %v723_v0 = vrot.slane %v722_v6, 4  ;;  %v730_v11 = vrot.slane %v729_v9, 4 }
 0x22c   : > { %v724_v12 = vadd.f32 %v723_v0, %v722_v6  ;;  %v731_v15 = vadd.f32 %v730_v11, %v729_v9 }
 0x22e   : > { %v725_v10 = vrot.slane %v724_v12, 2  ;;  %v732_v23 = vrot.slane %v731_v15, 2 }
 0x230   : > { %v726_v16 = vadd.f32 %v725_v10, %v724_v12  ;;  %v733_v55 = vadd.f32 %v732_v23, %v731_v15 }
 0x232   : > { %v727_v17 = vrot.slane %v726_v16, 1  ;;  %v734_v24 = vrot.slane %v733_v55, 1 }
 0x234   : > { %v728_v13 = vadd.f32 %v727_v17, %v726_v16  ;;  %v735_v25 = vadd.f32 %v734_v24, %v733_v55 }
 0x236   : > { %v736_v26 = vmax.f32 %v728_v13, 0.0  ;;  %v737_v27 = vmax.f32 %v735_v25, 0.0 }
 0x238   : > { %v900_v28 = vmul.f32 -1.442695, %v736_v26  ;;  %v901_v7 = vmul.f32 -1.442695, %v737_v27 }
 0x23a   : > { %1025 = vpow2.f32 %v900_v28 }
 0x23b   : > { %1027 = vpow2.f32 %v901_v7 }
 0x247   : > { %v1026_v30 = vpop.eup %1025 }
 0x248   : > { %v1028_v32 = vpop.eup %1027  ;;  %v744_v33 = vadd.f32 1.0, %v1026_v30 }
 0x249   : > { %v745_v14 = vadd.f32 1.0, %v1028_v32 }
 0x24a   : > { %1029 = vrcp.f32 %v744_v33 }
 0x24b   : > { %1031 = vrcp.f32 %v745_v14 }
 0x257   : > { %v1030_v35 = vpop.eup %1029 }
 0x258   : > { %v1032_v37 = vpop.eup %1031  ;;  %v750_v38 = vmul.f32 %v1030_v35, %v736_v26 }
 0x259   : > { %v751_v39 = vmul.f32 %v1032_v37, %v737_v27 }
 0x25b   : > { %v754_v40 = vcombine.low %v750_v38, %v751_v39 }
 0x25d   : > { %v761_v41 = vrot.slane %v754_v40, %v1404_v42 }
 0x25f   : > { %v768_v43 = vrot.slane %v761_v41, %v1404_v42 }
 0x261   : > { %770 = vst.msk [vmem:[%s225_s19] sm:$0x3] %vm1383_vm0, %v768_v43 }
 0x262   : > { %1126 = shalt.err (!%p1123_p4)
}
 0x263   : > { %s1127_s29 = scalar_lea.hbm %s784_s26, 32  ;;  %s1131_s4 = scalar_lea.hbm %s1617_s3, 64 }
 0x264   : > { %p1128_p6 = scmp.ne.s32.totalorder %s784_s26, %s1127_s29  ;;  %p1132_p3 = scmp.lt.s32.totalorder %s784_s26, %s1617_s3 }
 0x265   : > { %p1133_p5 = scmp.lt.s32.totalorder %s1131_s4, %s1127_s29 }
 0x266   : > { %p1129_p8 = pnand %p1128_p6, %p1340_p12 }
 0x267   : > { %p1134_p11 = por %p1133_p5, %p1132_p3 }
 0x268   : > { %p1130_p9 = pneg %p1129_p8 }
 0x26a   : > { %p1135_p7 = pnand %p1134_p11, %p1130_p9 }
 0x26c   : > { %1138 = shalt.err (!%p1135_p7)
}
 0x26d   : > { %919 = dma.vmem_to_hbm [thread:$0]  (%p1340_p12), %s787_s11, 32, %s784_s26, %s772_s18  }
 0x26e PF: > { %s798_s8 = sand.u32 1, %s1181_s12   ;;  %p1636_p10 = scmp.ne.s32.totalorder %s1622_s21, 0 }
 0x26f   : > { %p1637_p13 = scmp.ge.s32.totalorder %s1201_s17, 2  ;;  %s799_s10 = scalar_lea.sflag [#allocation7], %s798_s8 }
 0x271   : > { %p933_p0 = pnand %p1637_p13, %p1636_p10 }
 0x273   : > { %p934_p1 = pneg %p933_p0 }
 0x275   : > { %1176 = dma.done.wait (%p934_p1), %s799_s10, 32  }
 0x276   : > { %1178 = vsyncadd (%p934_p1), %s799_s10, 4294967264  ;;  %s18_s17 = sadd.s32 1, %s1201_s17   ;;  %s1638_s12 = smov %s1185_s13 }
 0x277   : > { %p15_p2 = scmp.ge.s32.totalorder %s18_s17, 4   ;;  %s1639_s13 = smov %s1189_s14 }
 0x278   : > { %s1640_s14 = smov %s1350_s24  ;;  %s1641_s15 = smov %s1197_s16 }
 0x279   : > { %s1642_s16 = smov %s1644_s7  ;;  %17 = sbr.rel (!%p15_p2) target bundleno = 6 (0x6), region = 97 }
 0x27e   :  { %804 = vsyncpa [#allocation6], 1 }
 0x27f   :  { %806 = vsyncpa [#allocation6 + $0x1], 1 }
 0x280   :  { %807 = vsyncpa [#allocation9], 1 }
 0x281   :  { %808 = vsyncpa [#allocation7], 1 }
 0x282   :  { %810 = vsyncpa [#allocation7 + $0x1], 1 }

</bundles_post_ra>
